<compile_context>
chip_gen: v5e
topology: v5e:2x2
jax: 0.10.0
libtpu: 0.0.40
codegen_flags: <defaults>
</compile_context>

<pallas_src>
import jax
import jax.numpy as jnp
from jax import lax
from jax.experimental import pallas as pl
from jax.experimental.pallas import tpu as pltpu


def _gpt2_preproc_kernel(ids_ref, wte_hbm, wpe_ref, out_ref, rows_vmem, sems):
    """One (batch row, seq tile): DMA-gather tq wte rows, add wpe tile, store.

    ids_ref  : (B, T) int32 in SMEM        (scalar prefetch)
    wte_hbm  : (V, D) in HBM (pl.ANY)      -- gathered row-by-row via DMA
    wpe_ref  : (tq, D) VMEM block          -- positions [t*tq, (t+1)*tq)
    out_ref  : (1, tq, D) VMEM block
    rows_vmem: (tq, D) VMEM scratch        -- gathered token embeddings
    sems     : (nbuf,) DMA semaphores      -- nbuf row-DMAs kept in flight
    """
    b = pl.program_id(0)
    t = pl.program_id(1)
    tq = out_ref.shape[1]
    V = wte_hbm.shape[0]
    nbuf = sems.shape[0]

    def token_id(r):
        tok = ids_ref[b, t * tq + r]
        # Clamp out-of-range ids instead of DMA-ing garbage / faulting.
        return jnp.clip(tok, 0, V - 1)

    def start_row(r):
        pltpu.make_async_copy(
            wte_hbm.at[pl.ds(token_id(r), 1), :],
            rows_vmem.at[pl.ds(r, 1), :],
            sems.at[r % nbuf],
        ).start()

    def wait_row(r):
        # Dummy source slice: wait() only needs the semaphore + transfer size.
        pltpu.make_async_copy(
            wte_hbm.at[pl.ds(0, 1), :],
            rows_vmem.at[pl.ds(r, 1), :],
            sems.at[r % nbuf],
        ).wait()

    # Prime up to nbuf outstanding row gathers, then keep the window full.
    n_prime = min(nbuf, tq)
    for r in range(n_prime):        # static unroll of the pipeline prologue
        start_row(r)

    def body(r, carry):
        wait_row(r)

        @pl.when(r + n_prime < tq)
        def _():
            start_row(r + n_prime)

        return carry

    lax.fori_loop(0, tq, body, 0)

    # Single vectorized add + one lane-dense block store.
    out_ref[0] = (rows_vmem[...] + wpe_ref[...]).astype(out_ref.dtype)


def _pick_seq_tile(T):
    for cand in (512, 256, 128, 64, 32, 16, 8):
        if T % cand == 0:
            return cand
    return T


def gpt2_preprocessing(input_ids, wte, wpe, *, embd_pdrop: float = 0.1,
                       seq_tile=None, nbuf: int = 16):
    """Pallas TPU implementation of GPT2Preprocessing.forward (eval mode).

    hidden[b, s] = wte[input_ids[b, s]] + wpe[s]
    """
    # TODO(synk): training-mode dropout (embd_pdrop) omitted; nn.Dropout is the
    # identity in eval mode, which is what this reproduces.
    del embd_pdrop

    B, T = input_ids.shape
    V, D = wte.shape
    max_pos = wpe.shape[0]
    assert T <= max_pos, "sequence longer than max_position_embeddings"

    tq = seq_tile if seq_tile is not None else _pick_seq_tile(T)
    assert T % tq == 0, "seq_tile must divide the sequence length"
    # (8, 128) block rule on the second-to-last dim of the wpe / out blocks.
    assert tq % 8 == 0 or (tq == T and T == max_pos), \
        "sequence tile must be a multiple of 8"

    ids = input_ids.astype(jnp.int32)
    nbuf = max(1, min(nbuf, tq))

    itemsize = jnp.dtype(wte.dtype).itemsize
    tile_bytes = tq * D * itemsize
    # Resident VMEM: wpe tile x2 (pipelined) + out tile x2 + gather scratch,
    # plus headroom; clamp to v7x-safe 64 MiB.
    vmem_bytes = int(min(64 * 1024 * 1024, max(4 * 1024 * 1024, 8 * tile_bytes)))

    # Memory-bound op: advertise bytes moved, not matmul FLOPs.
    bytes_accessed = int(B * T * 4 + 3 * B * T * D * itemsize)
    cost = pl.CostEstimate(flops=B * T * D, transcendentals=0,
                           bytes_accessed=bytes_accessed)

    out = pl.pallas_call(
        _gpt2_preproc_kernel,
        out_shape=jax.ShapeDtypeStruct((B, T, D), wte.dtype),
        grid_spec=pltpu.PrefetchScalarGridSpec(
            num_scalar_prefetch=1,                              # ids -> SMEM
            grid=(B, T // tq),
            in_specs=[
                pl.BlockSpec(memory_space=pl.ANY),              # wte stays in HBM
                pl.BlockSpec((tq, D), lambda b, t, ids: (t, 0)),  # wpe tile
            ],
            out_specs=pl.BlockSpec((1, tq, D), lambda b, t, ids: (b, t, 0)),
            scratch_shapes=[
                pltpu.VMEM((tq, D), wte.dtype),                 # gathered rows
                pltpu.SemaphoreType.DMA((nbuf,)),               # row-DMA sems
            ],
        ),
        compiler_params=pltpu.CompilerParams(
            dimension_semantics=("parallel", "parallel"),
            vmem_limit_bytes=vmem_bytes,
        ),
        cost_estimate=cost,
    )(ids, wte, wpe)
    return out


if __name__ == "__main__":
    # Small config consistent with the module's __init__:
    #   vocab_size=64, max_position_embeddings=16, hidden_size=32
    B, T = 2, 8
    V, MAX_POS, D = 64, 16, 32

    key = jax.random.PRNGKey(0)
    k_ids, k_wte, k_wpe = jax.random.split(key, 3)

    input_ids = jax.random.randint(k_ids, (B, T), 0, V, dtype=jnp.int32)
    # Deterministic synthetic parameters (nn.Embedding-like init, scaled).
    wte = (0.02 * jax.random.normal(k_wte, (V, D))).astype(jnp.float32)
    wpe = (0.02 * jax.random.normal(k_wpe, (MAX_POS, D))).astype(jnp.float32)

    hidden = gpt2_preprocessing(input_ids, wte, wpe)
    hidden = jax.block_until_ready(hidden)

    # Pure-JAX reference: wte[ids] + wpe[arange(T)]
    ref = wte[input_ids] + wpe[jnp.arange(T)][None, :, :]
    assert hidden.shape == (B, T, D)
    assert jnp.allclose(hidden, ref, atol=1e-6, rtol=1e-6)

    print("KERNEL_OK")
</pallas_src>

<mosaic_0001>
module attributes {stable_mosaic.version = 11 : i64} {
  func.func @_gpt2_preproc_kernel(%arg0: i32, %arg1: i32, %arg2: memref<2x8xi32, #tpu.memory_space<smem>>, %arg3: memref<64x32xf32, #tpu.memory_space<any>>, %arg4: memref<8x32xf32, #tpu.memory_space<vmem>>, %arg5: memref<1x8x32xf32, #tpu.memory_space<vmem>>, %arg6: memref<8x32xf32, #tpu.memory_space<vmem>>, %arg7: memref<8x!tpu.dma_semaphore, #tpu.memory_space<semaphore_mem>>) attributes {dimension_semantics = [#tpu.dimension_semantics<parallel>, #tpu.dimension_semantics<parallel>], iteration_bounds = array<i64: 2, 1>, scalar_prefetch = 1 : i64, scratch_operands = 2 : i64, tpu.core_type = #tpu.core_type<tc>, window_params = [{}, {transform_indices = @transform_1, window_bounds = array<i64: 8, 32>}, {transform_indices = @transform_2, window_bounds = array<i64: 1, 8, 32>}]} {
    %c8_i32 = arith.constant 8 : i32
    %0 = arith.muli %arg1, %c8_i32 : i32
    %c0_i32 = arith.constant 0 : i32
    %1 = arith.addi %0, %c0_i32 : i32
    %2 = arith.index_cast %arg0 : i32 to index
    %3 = arith.index_cast %1 : i32 to index
    %4 = memref.load %arg2[%2, %3] : memref<2x8xi32, #tpu.memory_space<smem>>
    %c0_i32_0 = arith.constant 0 : i32
    %c63_i32 = arith.constant 63 : i32
    %5 = arith.maxsi %c0_i32_0, %4 : i32
    %6 = arith.minsi %c63_i32, %5 : i32
    %c0_i32_1 = arith.constant 0 : i32
    %c0_i32_2 = arith.constant 0 : i32
    %7 = tpu.memref_slice %arg3[%6, %c0_i32_2] : memref<64x32xf32, #tpu.memory_space<any>> -> memref<1x32xf32, #tpu.memory_space<any>>
    %c0_i32_3 = arith.constant 0 : i32
    %c0_i32_4 = arith.constant 0 : i32
    %8 = tpu.memref_slice %arg6[%c0_i32_3, %c0_i32_4] : memref<8x32xf32, #tpu.memory_space<vmem>> -> memref<1x32xf32, #tpu.memory_space<vmem>>
    %9 = tpu.memref_slice %arg7[%c0_i32_1] : memref<8x!tpu.dma_semaphore, #tpu.memory_space<semaphore_mem>> -> memref<1x!tpu.dma_semaphore, #tpu.memory_space<semaphore_mem>>
    %10 = tpu.memref_squeeze %9 : memref<1x!tpu.dma_semaphore, #tpu.memory_space<semaphore_mem>> -> memref<!tpu.dma_semaphore, #tpu.memory_space<semaphore_mem>>
    tpu.enqueue_dma source(%7 : memref<1x32xf32, #tpu.memory_space<any>>) target(%8 : memref<1x32xf32, #tpu.memory_space<vmem>>) target_semaphore(%10 : memref<!tpu.dma_semaphore, #tpu.memory_space<semaphore_mem>>)
    %c8_i32_5 = arith.constant 8 : i32
    %11 = arith.muli %arg1, %c8_i32_5 : i32
    %c1_i32 = arith.constant 1 : i32
    %12 = arith.addi %11, %c1_i32 : i32
    %13 = arith.index_cast %arg0 : i32 to index
    %14 = arith.index_cast %12 : i32 to index
    %15 = memref.load %arg2[%13, %14] : memref<2x8xi32, #tpu.memory_space<smem>>
    %c0_i32_6 = arith.constant 0 : i32
    %c63_i32_7 = arith.constant 63 : i32
    %16 = arith.maxsi %c0_i32_6, %15 : i32
    %17 = arith.minsi %c63_i32_7, %16 : i32
    %c1_i32_8 = arith.constant 1 : i32
    %c0_i32_9 = arith.constant 0 : i32
    %18 = tpu.memref_slice %arg3[%17, %c0_i32_9] : memref<64x32xf32, #tpu.memory_space<any>> -> memref<1x32xf32, #tpu.memory_space<any>>
    %c1_i32_10 = arith.constant 1 : i32
    %c0_i32_11 = arith.constant 0 : i32
    %19 = tpu.memref_slice %arg6[%c1_i32_10, %c0_i32_11] : memref<8x32xf32, #tpu.memory_space<vmem>> -> memref<1x32xf32, #tpu.memory_space<vmem>>
    %20 = tpu.memref_slice %arg7[%c1_i32_8] : memref<8x!tpu.dma_semaphore, #tpu.memory_space<semaphore_mem>> -> memref<1x!tpu.dma_semaphore, #tpu.memory_space<semaphore_mem>>
    %21 = tpu.memref_squeeze %20 : memref<1x!tpu.dma_semaphore, #tpu.memory_space<semaphore_mem>> -> memref<!tpu.dma_semaphore, #tpu.memory_space<semaphore_mem>>
    tpu.enqueue_dma source(%18 : memref<1x32xf32, #tpu.memory_space<any>>) target(%19 : memref<1x32xf32, #tpu.memory_space<vmem>>) target_semaphore(%21 : memref<!tpu.dma_semaphore, #tpu.memory_space<semaphore_mem>>)
    %c8_i32_12 = arith.constant 8 : i32
    %22 = arith.muli %arg1, %c8_i32_12 : i32
    %c2_i32 = arith.constant 2 : i32
    %23 = arith.addi %22, %c2_i32 : i32
    %24 = arith.index_cast %arg0 : i32 to index
    %25 = arith.index_cast %23 : i32 to index
    %26 = memref.load %arg2[%24, %25] : memref<2x8xi32, #tpu.memory_space<smem>>
    %c0_i32_13 = arith.constant 0 : i32
    %c63_i32_14 = arith.constant 63 : i32
    %27 = arith.maxsi %c0_i32_13, %26 : i32
    %28 = arith.minsi %c63_i32_14, %27 : i32
    %c2_i32_15 = arith.constant 2 : i32
    %c0_i32_16 = arith.constant 0 : i32
    %29 = tpu.memref_slice %arg3[%28, %c0_i32_16] : memref<64x32xf32, #tpu.memory_space<any>> -> memref<1x32xf32, #tpu.memory_space<any>>
    %c2_i32_17 = arith.constant 2 : i32
    %c0_i32_18 = arith.constant 0 : i32
    %30 = tpu.memref_slice %arg6[%c2_i32_17, %c0_i32_18] : memref<8x32xf32, #tpu.memory_space<vmem>> -> memref<1x32xf32, #tpu.memory_space<vmem>>
    %31 = tpu.memref_slice %arg7[%c2_i32_15] : memref<8x!tpu.dma_semaphore, #tpu.memory_space<semaphore_mem>> -> memref<1x!tpu.dma_semaphore, #tpu.memory_space<semaphore_mem>>
    %32 = tpu.memref_squeeze %31 : memref<1x!tpu.dma_semaphore, #tpu.memory_space<semaphore_mem>> -> memref<!tpu.dma_semaphore, #tpu.memory_space<semaphore_mem>>
    tpu.enqueue_dma source(%29 : memref<1x32xf32, #tpu.memory_space<any>>) target(%30 : memref<1x32xf32, #tpu.memory_space<vmem>>) target_semaphore(%32 : memref<!tpu.dma_semaphore, #tpu.memory_space<semaphore_mem>>)
    %c8_i32_19 = arith.constant 8 : i32
    %33 = arith.muli %arg1, %c8_i32_19 : i32
    %c3_i32 = arith.constant 3 : i32
    %34 = arith.addi %33, %c3_i32 : i32
    %35 = arith.index_cast %arg0 : i32 to index
    %36 = arith.index_cast %34 : i32 to index
    %37 = memref.load %arg2[%35, %36] : memref<2x8xi32, #tpu.memory_space<smem>>
    %c0_i32_20 = arith.constant 0 : i32
    %c63_i32_21 = arith.constant 63 : i32
    %38 = arith.maxsi %c0_i32_20, %37 : i32
    %39 = arith.minsi %c63_i32_21, %38 : i32
    %c3_i32_22 = arith.constant 3 : i32
    %c0_i32_23 = arith.constant 0 : i32
    %40 = tpu.memref_slice %arg3[%39, %c0_i32_23] : memref<64x32xf32, #tpu.memory_space<any>> -> memref<1x32xf32, #tpu.memory_space<any>>
    %c3_i32_24 = arith.constant 3 : i32
    %c0_i32_25 = arith.constant 0 : i32
    %41 = tpu.memref_slice %arg6[%c3_i32_24, %c0_i32_25] : memref<8x32xf32, #tpu.memory_space<vmem>> -> memref<1x32xf32, #tpu.memory_space<vmem>>
    %42 = tpu.memref_slice %arg7[%c3_i32_22] : memref<8x!tpu.dma_semaphore, #tpu.memory_space<semaphore_mem>> -> memref<1x!tpu.dma_semaphore, #tpu.memory_space<semaphore_mem>>
    %43 = tpu.memref_squeeze %42 : memref<1x!tpu.dma_semaphore, #tpu.memory_space<semaphore_mem>> -> memref<!tpu.dma_semaphore, #tpu.memory_space<semaphore_mem>>
    tpu.enqueue_dma source(%40 : memref<1x32xf32, #tpu.memory_space<any>>) target(%41 : memref<1x32xf32, #tpu.memory_space<vmem>>) target_semaphore(%43 : memref<!tpu.dma_semaphore, #tpu.memory_space<semaphore_mem>>)
    %c8_i32_26 = arith.constant 8 : i32
    %44 = arith.muli %arg1, %c8_i32_26 : i32
    %c4_i32 = arith.constant 4 : i32
    %45 = arith.addi %44, %c4_i32 : i32
    %46 = arith.index_cast %arg0 : i32 to index
    %47 = arith.index_cast %45 : i32 to index
    %48 = memref.load %arg2[%46, %47] : memref<2x8xi32, #tpu.memory_space<smem>>
    %c0_i32_27 = arith.constant 0 : i32
    %c63_i32_28 = arith.constant 63 : i32
    %49 = arith.maxsi %c0_i32_27, %48 : i32
    %50 = arith.minsi %c63_i32_28, %49 : i32
    %c4_i32_29 = arith.constant 4 : i32
    %c0_i32_30 = arith.constant 0 : i32
    %51 = tpu.memref_slice %arg3[%50, %c0_i32_30] : memref<64x32xf32, #tpu.memory_space<any>> -> memref<1x32xf32, #tpu.memory_space<any>>
    %c4_i32_31 = arith.constant 4 : i32
    %c0_i32_32 = arith.constant 0 : i32
    %52 = tpu.memref_slice %arg6[%c4_i32_31, %c0_i32_32] : memref<8x32xf32, #tpu.memory_space<vmem>> -> memref<1x32xf32, #tpu.memory_space<vmem>>
    %53 = tpu.memref_slice %arg7[%c4_i32_29] : memref<8x!tpu.dma_semaphore, #tpu.memory_space<semaphore_mem>> -> memref<1x!tpu.dma_semaphore, #tpu.memory_space<semaphore_mem>>
    %54 = tpu.memref_squeeze %53 : memref<1x!tpu.dma_semaphore, #tpu.memory_space<semaphore_mem>> -> memref<!tpu.dma_semaphore, #tpu.memory_space<semaphore_mem>>
    tpu.enqueue_dma source(%51 : memref<1x32xf32, #tpu.memory_space<any>>) target(%52 : memref<1x32xf32, #tpu.memory_space<vmem>>) target_semaphore(%54 : memref<!tpu.dma_semaphore, #tpu.memory_space<semaphore_mem>>)
    %c8_i32_33 = arith.constant 8 : i32
    %55 = arith.muli %arg1, %c8_i32_33 : i32
    %c5_i32 = arith.constant 5 : i32
    %56 = arith.addi %55, %c5_i32 : i32
    %57 = arith.index_cast %arg0 : i32 to index
    %58 = arith.index_cast %56 : i32 to index
    %59 = memref.load %arg2[%57, %58] : memref<2x8xi32, #tpu.memory_space<smem>>
    %c0_i32_34 = arith.constant 0 : i32
    %c63_i32_35 = arith.constant 63 : i32
    %60 = arith.maxsi %c0_i32_34, %59 : i32
    %61 = arith.minsi %c63_i32_35, %60 : i32
    %c5_i32_36 = arith.constant 5 : i32
    %c0_i32_37 = arith.constant 0 : i32
    %62 = tpu.memref_slice %arg3[%61, %c0_i32_37] : memref<64x32xf32, #tpu.memory_space<any>> -> memref<1x32xf32, #tpu.memory_space<any>>
    %c5_i32_38 = arith.constant 5 : i32
    %c0_i32_39 = arith.constant 0 : i32
    %63 = tpu.memref_slice %arg6[%c5_i32_38, %c0_i32_39] : memref<8x32xf32, #tpu.memory_space<vmem>> -> memref<1x32xf32, #tpu.memory_space<vmem>>
    %64 = tpu.memref_slice %arg7[%c5_i32_36] : memref<8x!tpu.dma_semaphore, #tpu.memory_space<semaphore_mem>> -> memref<1x!tpu.dma_semaphore, #tpu.memory_space<semaphore_mem>>
    %65 = tpu.memref_squeeze %64 : memref<1x!tpu.dma_semaphore, #tpu.memory_space<semaphore_mem>> -> memref<!tpu.dma_semaphore, #tpu.memory_space<semaphore_mem>>
    tpu.enqueue_dma source(%62 : memref<1x32xf32, #tpu.memory_space<any>>) target(%63 : memref<1x32xf32, #tpu.memory_space<vmem>>) target_semaphore(%65 : memref<!tpu.dma_semaphore, #tpu.memory_space<semaphore_mem>>)
    %c8_i32_40 = arith.constant 8 : i32
    %66 = arith.muli %arg1, %c8_i32_40 : i32
    %c6_i32 = arith.constant 6 : i32
    %67 = arith.addi %66, %c6_i32 : i32
    %68 = arith.index_cast %arg0 : i32 to index
    %69 = arith.index_cast %67 : i32 to index
    %70 = memref.load %arg2[%68, %69] : memref<2x8xi32, #tpu.memory_space<smem>>
    %c0_i32_41 = arith.constant 0 : i32
    %c63_i32_42 = arith.constant 63 : i32
    %71 = arith.maxsi %c0_i32_41, %70 : i32
    %72 = arith.minsi %c63_i32_42, %71 : i32
    %c6_i32_43 = arith.constant 6 : i32
    %c0_i32_44 = arith.constant 0 : i32
    %73 = tpu.memref_slice %arg3[%72, %c0_i32_44] : memref<64x32xf32, #tpu.memory_space<any>> -> memref<1x32xf32, #tpu.memory_space<any>>
    %c6_i32_45 = arith.constant 6 : i32
    %c0_i32_46 = arith.constant 0 : i32
    %74 = tpu.memref_slice %arg6[%c6_i32_45, %c0_i32_46] : memref<8x32xf32, #tpu.memory_space<vmem>> -> memref<1x32xf32, #tpu.memory_space<vmem>>
    %75 = tpu.memref_slice %arg7[%c6_i32_43] : memref<8x!tpu.dma_semaphore, #tpu.memory_space<semaphore_mem>> -> memref<1x!tpu.dma_semaphore, #tpu.memory_space<semaphore_mem>>
    %76 = tpu.memref_squeeze %75 : memref<1x!tpu.dma_semaphore, #tpu.memory_space<semaphore_mem>> -> memref<!tpu.dma_semaphore, #tpu.memory_space<semaphore_mem>>
    tpu.enqueue_dma source(%73 : memref<1x32xf32, #tpu.memory_space<any>>) target(%74 : memref<1x32xf32, #tpu.memory_space<vmem>>) target_semaphore(%76 : memref<!tpu.dma_semaphore, #tpu.memory_space<semaphore_mem>>)
    %c8_i32_47 = arith.constant 8 : i32
    %77 = arith.muli %arg1, %c8_i32_47 : i32
    %c7_i32 = arith.constant 7 : i32
    %78 = arith.addi %77, %c7_i32 : i32
    %79 = arith.index_cast %arg0 : i32 to index
    %80 = arith.index_cast %78 : i32 to index
    %81 = memref.load %arg2[%79, %80] : memref<2x8xi32, #tpu.memory_space<smem>>
    %c0_i32_48 = arith.constant 0 : i32
    %c63_i32_49 = arith.constant 63 : i32
    %82 = arith.maxsi %c0_i32_48, %81 : i32
    %83 = arith.minsi %c63_i32_49, %82 : i32
    %c7_i32_50 = arith.constant 7 : i32
    %c0_i32_51 = arith.constant 0 : i32
    %84 = tpu.memref_slice %arg3[%83, %c0_i32_51] : memref<64x32xf32, #tpu.memory_space<any>> -> memref<1x32xf32, #tpu.memory_space<any>>
    %c7_i32_52 = arith.constant 7 : i32
    %c0_i32_53 = arith.constant 0 : i32
    %85 = tpu.memref_slice %arg6[%c7_i32_52, %c0_i32_53] : memref<8x32xf32, #tpu.memory_space<vmem>> -> memref<1x32xf32, #tpu.memory_space<vmem>>
    %86 = tpu.memref_slice %arg7[%c7_i32_50] : memref<8x!tpu.dma_semaphore, #tpu.memory_space<semaphore_mem>> -> memref<1x!tpu.dma_semaphore, #tpu.memory_space<semaphore_mem>>
    %87 = tpu.memref_squeeze %86 : memref<1x!tpu.dma_semaphore, #tpu.memory_space<semaphore_mem>> -> memref<!tpu.dma_semaphore, #tpu.memory_space<semaphore_mem>>
    tpu.enqueue_dma source(%84 : memref<1x32xf32, #tpu.memory_space<any>>) target(%85 : memref<1x32xf32, #tpu.memory_space<vmem>>) target_semaphore(%87 : memref<!tpu.dma_semaphore, #tpu.memory_space<semaphore_mem>>)
    %c0_i32_54 = arith.constant 0 : i32
    %c8_i32_55 = arith.constant 8 : i32
    %88 = arith.addi %c0_i32_54, %c8_i32_55 : i32
    %c1_i32_56 = arith.constant 1 : i32
    scf.for %arg8 = %c0_i32_54 to %88 step %c1_i32_56  : i32 {
      %c8_i32_64 = arith.constant 8 : i32
      %c0_i32_65 = arith.constant 0 : i32
      %95 = arith.cmpi eq, %c8_i32_64, %c0_i32_65 : i32
      %c1_i32_66 = arith.constant 1 : i32
      %96 = arith.select %95, %c1_i32_66, %c8_i32_64 : i32
      %97 = arith.remsi %arg8, %96 : i32
      %c0_i32_67 = arith.constant 0 : i32
      %98 = arith.cmpi ne, %97, %c0_i32_67 : i32
      %c0_i32_68 = arith.constant 0 : i32
      %99 = arith.cmpi slt, %97, %c0_i32_68 : i32
      %c0_i32_69 = arith.constant 0 : i32
      %100 = arith.cmpi slt, %96, %c0_i32_69 : i32
      %101 = arith.xori %99, %100 : i1
      %102 = arith.andi %101, %98 : i1
      %103 = arith.addi %97, %96 : i32
      %104 = arith.select %102, %103, %97 : i32
      %c0_i32_70 = arith.constant 0 : i32
      %c0_i32_71 = arith.constant 0 : i32
      %105 = tpu.memref_slice %arg3[%c0_i32_70, %c0_i32_71] : memref<64x32xf32, #tpu.memory_space<any>> -> memref<1x32xf32, #tpu.memory_space<any>>
      %c0_i32_72 = arith.constant 0 : i32
      %106 = tpu.memref_slice %arg6[%arg8, %c0_i32_72] : memref<8x32xf32, #tpu.memory_space<vmem>> -> memref<1x32xf32, #tpu.memory_space<vmem>>
      %107 = tpu.memref_slice %arg7[%104] : memref<8x!tpu.dma_semaphore, #tpu.memory_space<semaphore_mem>> -> memref<1x!tpu.dma_semaphore, #tpu.memory_space<semaphore_mem>>
      %108 = tpu.memref_squeeze %107 : memref<1x!tpu.dma_semaphore, #tpu.memory_space<semaphore_mem>> -> memref<!tpu.dma_semaphore, #tpu.memory_space<semaphore_mem>>
      tpu.wait_dma2 semaphore(%108 : memref<!tpu.dma_semaphore, #tpu.memory_space<semaphore_mem>>) src(%105 : memref<1x32xf32, #tpu.memory_space<any>>) dst(%106 : memref<1x32xf32, #tpu.memory_space<vmem>>)
      %c8_i32_73 = arith.constant 8 : i32
      %109 = arith.addi %arg8, %c8_i32_73 : i32
      %c8_i32_74 = arith.constant 8 : i32
      %110 = arith.cmpi slt, %109, %c8_i32_74 : i32
      %111 = arith.extui %110 : i1 to i32
      %c0_i32_75 = arith.constant 0 : i32
      %112 = arith.cmpi ne, %111, %c0_i32_75 : i32
      scf.if %112 {
        %c8_i32_76 = arith.constant 8 : i32
        %113 = arith.addi %arg8, %c8_i32_76 : i32
        %c8_i32_77 = arith.constant 8 : i32
        %114 = arith.muli %arg1, %c8_i32_77 : i32
        %115 = arith.addi %114, %113 : i32
        %116 = arith.index_cast %arg0 : i32 to index
        %117 = arith.index_cast %115 : i32 to index
        %118 = memref.load %arg2[%116, %117] : memref<2x8xi32, #tpu.memory_space<smem>>
        %c0_i32_78 = arith.constant 0 : i32
        %c63_i32_79 = arith.constant 63 : i32
        %119 = arith.maxsi %c0_i32_78, %118 : i32
        %120 = arith.minsi %c63_i32_79, %119 : i32
        %c8_i32_80 = arith.constant 8 : i32
        %c0_i32_81 = arith.constant 0 : i32
        %121 = arith.cmpi eq, %c8_i32_80, %c0_i32_81 : i32
        %c1_i32_82 = arith.constant 1 : i32
        %122 = arith.select %121, %c1_i32_82, %c8_i32_80 : i32
        %123 = arith.remsi %113, %122 : i32
        %c0_i32_83 = arith.constant 0 : i32
        %124 = arith.cmpi ne, %123, %c0_i32_83 : i32
        %c0_i32_84 = arith.constant 0 : i32
        %125 = arith.cmpi slt, %123, %c0_i32_84 : i32
        %c0_i32_85 = arith.constant 0 : i32
        %126 = arith.cmpi slt, %122, %c0_i32_85 : i32
        %127 = arith.xori %125, %126 : i1
        %128 = arith.andi %127, %124 : i1
        %129 = arith.addi %123, %122 : i32
        %130 = arith.select %128, %129, %123 : i32
        %c0_i32_86 = arith.constant 0 : i32
        %131 = tpu.memref_slice %arg3[%120, %c0_i32_86] : memref<64x32xf32, #tpu.memory_space<any>> -> memref<1x32xf32, #tpu.memory_space<any>>
        %c0_i32_87 = arith.constant 0 : i32
        %132 = tpu.memref_slice %arg6[%113, %c0_i32_87] : memref<8x32xf32, #tpu.memory_space<vmem>> -> memref<1x32xf32, #tpu.memory_space<vmem>>
        %133 = tpu.memref_slice %arg7[%130] : memref<8x!tpu.dma_semaphore, #tpu.memory_space<semaphore_mem>> -> memref<1x!tpu.dma_semaphore, #tpu.memory_space<semaphore_mem>>
        %134 = tpu.memref_squeeze %133 : memref<1x!tpu.dma_semaphore, #tpu.memory_space<semaphore_mem>> -> memref<!tpu.dma_semaphore, #tpu.memory_space<semaphore_mem>>
        tpu.enqueue_dma source(%131 : memref<1x32xf32, #tpu.memory_space<any>>) target(%132 : memref<1x32xf32, #tpu.memory_space<vmem>>) target_semaphore(%134 : memref<!tpu.dma_semaphore, #tpu.memory_space<semaphore_mem>>)
      } else {
      }
    }
    %c8_i32_57 = arith.constant 8 : i32
    %c0 = arith.constant 0 : index
    %c0_58 = arith.constant 0 : index
    %89 = vector.load %arg6[%c0, %c0_58] : memref<8x32xf32, #tpu.memory_space<vmem>>, vector<8x32xf32>
    %c0_59 = arith.constant 0 : index
    %c0_60 = arith.constant 0 : index
    %90 = vector.load %arg4[%c0_59, %c0_60] : memref<8x32xf32, #tpu.memory_space<vmem>>, vector<8x32xf32>
    %91 = arith.addf %89, %90 : vector<8x32xf32>
    %c0_61 = arith.constant 0 : index
    %c0_62 = arith.constant 0 : index
    %c0_63 = arith.constant 0 : index
    %92 = vector.load %arg5[%c0_61, %c0_62, %c0_63] : memref<1x8x32xf32, #tpu.memory_space<vmem>>, vector<1x8x32xf32>
    %93 = vector.shape_cast %92 : vector<1x8x32xf32> to vector<8x32xf32>
    %94 = vector.shape_cast %91 : vector<8x32xf32> to vector<1x8x32xf32>
    tpu.vector_store %arg5[%c0_61, %c0_62, %c0_63], %94 {strides = array<i32>} : memref<1x8x32xf32, #tpu.memory_space<vmem>>, vector<1x8x32xf32>,
    return
  }
  func.func @transform_1(%arg0: i32, %arg1: i32, %arg2: memref<2x8xi32, #tpu.memory_space<smem>>) -> (i32, i32) {
    %c0_i32 = arith.constant 0 : i32
    %c0_i32_0 = arith.constant 0 : i32
    return %arg1, %c0_i32 : i32, i32
  }
  func.func @transform_2(%arg0: i32, %arg1: i32, %arg2: memref<2x8xi32, #tpu.memory_space<smem>>) -> (i32, i32, i32) {
    %c0_i32 = arith.constant 0 : i32
    %c0_i32_0 = arith.constant 0 : i32
    return %arg0, %arg1, %c0_i32 : i32, i32, i32
  }
}

</mosaic_0001>

<bundles_post_ra>
// kernel: tpu_custom_call.1
= control target key start
LH: loop header
LB: loop body
LE: loop exit
PB: predicated region body
PF: predicated region fallthrough
CT: control target
= control target key end

     0   :  { %s1091_s15 = smov [#allocation5]   ;;  %s1273_s0 = inlined_call_operand.vmem [shape: s32[2,8], index: 0, kind: input, shape index: {}]   ;;  %s1274_s1 = inlined_call_operand.vmem [shape: f32[64,32], index: 1, kind: input, shape index: {}]   ;;  %s1275_s2 = inlined_call_operand.vmem [shape: f32[16,32], index: 2, kind: input, shape index: {}]   ;;  %s1276_s3 = inlined_call_operand.hbm [shape: f32[2,8,32], index: 3, kind: output, shape index: {}]  }
   0x1   :  { %s9_s14 = sshll.u32 %s1273_s0, 4  ;;  %s10_s14 = int_to_ptr.vmem [resolvable:$true] %s9_s14 }
   0x2   :  { %12 = dma.vmem_to_smem %s10_s14, 32, %s1091_s15, [#allocation4] }
   0x3   :  { %1055 = dma.done.wait [#allocation4], 32 }
   0x4   :  { %1056 = vsyncadd [#allocation4], 4294967264 }
   0x5   :  { %15 = sfence }
   0x6   :  { %16 = vsyncpa [#allocation7], 0 }
   0x7   :  { %18 = vsyncpa [#allocation7 + $0x1], 0  ;;  %s1115_s16 = smov 0   ;;  %s1117_s17 = smov 0  }
   0x8   :  { %s1119_s18 = smov 0   ;;  %s1121_s19 = smov 0  }
   0x9   :  { %s1123_s20 = smov 0   ;;  %s1125_s21 = smov 0  }
   0xa LB: > { %s825_s0 = sadd.s32 4294967295, %s1085_s21   ;;  %s826_s22 = sadd.s32 4294967294, %s1085_s21   ;;  %s1085_s21 = sphi %s1125_s21, %s24_s21   ;;  %s1081_s20 = sphi %s1123_s20, %s1283_s20   ;;  %s1077_s19 = sphi %s1121_s19, %s1282_s19   ;;  %s1073_s18 = sphi %s1119_s18, %s1281_s18   ;;  %s1069_s17 = sphi %s1117_s17, %s1280_s17   ;;  %s1065_s16 = sphi %s1115_s16, %s1279_s16  }
   0xb   : > { %s36_s23 = sadd.s32 1, %s1081_s20  ;;  %s71_s24 = sadd.s32 1, %s1073_s18 }
   0xc   : > { %p38_p0 = scmp.ge.s32.totalorder %s36_s23, 2  ;;  %p81_p1 = scmp.ne.s32.totalorder %s1073_s18, %s1069_s17 }
   0xd   : > { %p82_p2 = scmp.eq.s32.totalorder %s825_s0, 1  ;;  %p87_p3 = scmp.ne.s32.totalorder %s1069_s17, %s1065_s16 }
   0xe   : > { %s1285_s23 = smov (%p38_p0, %s36_s23), 0  ;;  %p88_p5 = scmp.eq.s32.totalorder %s826_s22, 1 }
   0xf   : > { %p1155_p4 = por %p82_p2, %p81_p1  ;;  %s66_s26 = ssub.s32 %s1081_s20, %s1285_s23 }
  0x10   : > { %p829_p6 = scmp.ge.s32.totalorder %s1085_s21, 1  ;;  %p69_p7 = scmp.eq.s32.totalorder %s66_s26, 0 }
  0x11   : > { %p1162_p8 = por %p88_p5, %p87_p3  ;;  %p113_p9 = scmp.lt.s32.totalorder %s1085_s21, 3 }
  0x12   : > { %s1168_s28 = scalar_select %p69_p7, %s1073_s18, %s71_s24  }
  0x13   : > { %p114_p10 = pnand %p829_p6, %p113_p9 }
  0x14   : > { %s129_s29 = sand.u32 (!%p114_p10), 1, %s1069_s17   ;;  %s1172_s30 = sshll.u32 (!%p114_p10), %s1077_s19, 7 }
  0x15   : > { %117 = sbr.rel (%p114_p10) target bundleno = 181 (0xb5), region = 24  ;;  %s1176_s4 = sshll.u32 (!%p114_p10), %s129_s29, 3 }
  0x16   : > { %s144_s5 = sld [smem:[#allocation5 + %s1172_s30]] (!%p114_p10)  ;;  %s131_s9 = scalar_lea.vmem (!%p114_p10), [#allocation6], %s1176_s4 }
  0x1c   : > { %p145_p11 = scmp.gt.s32.totalorder %s144_s5, 0  ;;  %p832_p12 = scmp.lt.s32.totalorder %s144_s5, 63 }
  0x1e   : > { %s1287_s5 = smov (!%p145_p11, %s144_s5), 0 }
  0x1f   : > { %s1289_s5 = smov (!%p832_p12, %s1287_s5), 63 }
  0x20   : > { %s149_s8 = scalar_lea.vmem %s1274_s1, %s1289_s5 }
  0x21   : > { %v164_v0 = vld [vmem:[%s149_s8] sm:$0x1] }
  0x22   : > { %165 = vst [vmem:[#allocation2] sm:$0x1] %v164_v0 }
  0x23   : > { %183 = vsyncadd [#allocation3], 16  ;;  %s191_s10 = sadd.s32 1, %s1172_s30 }
  0x24   : > { %s192_s11 = sld [smem:[#allocation5 + %s191_s10]] }
  0x2a   : > { %p193_p13 = scmp.gt.s32.totalorder %s192_s11, 0  ;;  %p838_p0 = scmp.lt.s32.totalorder %s192_s11, 63 }
  0x2c   : > { %s1291_s11 = smov (!%p193_p13, %s192_s11), 0 }
  0x2d   : > { %s1293_s11 = smov (!%p838_p0, %s1291_s11), 63 }
  0x2e   : > { %s197_s14 = scalar_lea.vmem %s1274_s1, %s1293_s11 }
  0x2f   : > { %v214_v1 = vld [vmem:[%s197_s14] sm:$0x1] }
  0x30   : > { %215 = vst [vmem:[#allocation2 + $0x1] sm:$0x1] %v214_v1 }
  0x31   : > { %233 = vsyncadd [#allocation3 + $0x1], 16  ;;  %s241_s15 = sadd.s32 2, %s1172_s30 }
  0x32   : > { %s242_s0 = sld [smem:[#allocation5 + %s241_s15]] }
  0x38   : > { %p243_p1 = scmp.gt.s32.totalorder %s242_s0, 0  ;;  %p844_p2 = scmp.lt.s32.totalorder %s242_s0, 63 }
  0x3a   : > { %s1295_s0 = smov (!%p243_p1, %s242_s0), 0 }
  0x3b   : > { %s1297_s0 = smov (!%p844_p2, %s1295_s0), 63 }
  0x3c   : > { %s247_s26 = scalar_lea.vmem %s1274_s1, %s1297_s0 }
  0x3d   : > { %v264_v2 = vld [vmem:[%s247_s26] sm:$0x1] }
  0x3e   : > { %265 = vst [vmem:[#allocation2 + $0x2] sm:$0x1] %v264_v2 }
  0x3f   : > { %283 = vsyncadd [#allocation3 + $0x2], 16  ;;  %s291_s5 = sadd.s32 3, %s1172_s30 }
  0x40   : > { %s292_s6 = sld [smem:[#allocation5 + %s291_s5]] }
  0x46   : > { %p293_p3 = scmp.gt.s32.totalorder %s292_s6, 0  ;;  %p850_p5 = scmp.lt.s32.totalorder %s292_s6, 63 }
  0x48   : > { %s1299_s6 = smov (!%p293_p3, %s292_s6), 0 }
  0x49   : > { %s1301_s6 = smov (!%p850_p5, %s1299_s6), 63 }
  0x4a   : > { %s297_s10 = scalar_lea.vmem %s1274_s1, %s1301_s6 }
  0x4b   : > { %v314_v3 = vld [vmem:[%s297_s10] sm:$0x1] }
  0x4c   : > { %315 = vst [vmem:[#allocation2 + $0x3] sm:$0x1] %v314_v3 }
  0x4d   : > { %333 = vsyncadd [#allocation3 + $0x3], 16  ;;  %s341_s11 = sadd.s32 4, %s1172_s30 }
  0x4e   : > { %s342_s12 = sld [smem:[#allocation5 + %s341_s11]] }
  0x54   : > { %p343_p6 = scmp.gt.s32.totalorder %s342_s12, 0  ;;  %p856_p7 = scmp.lt.s32.totalorder %s342_s12, 63 }
  0x56   : > { %s1303_s12 = smov (!%p343_p6, %s342_s12), 0 }
  0x57   : > { %s1305_s12 = smov (!%p856_p7, %s1303_s12), 63 }
  0x58   : > { %s347_s15 = scalar_lea.vmem %s1274_s1, %s1305_s12 }
  0x59   : > { %v364_v4 = vld [vmem:[%s347_s15] sm:$0x1] }
  0x5a   : > { %365 = vst [vmem:[#allocation2 + $0x4] sm:$0x1] %v364_v4 }
  0x5b   : > { %383 = vsyncadd [#allocation3 + $0x4], 16  ;;  %s391_s0 = sadd.s32 5, %s1172_s30 }
  0x5c   : > { %s392_s22 = sld [smem:[#allocation5 + %s391_s0]] }
  0x62   : > { %p393_p9 = scmp.gt.s32.totalorder %s392_s22, 0  ;;  %p862_p10 = scmp.lt.s32.totalorder %s392_s22, 63 }
  0x64   : > { %s1307_s22 = smov (!%p393_p9, %s392_s22), 0 }
  0x65   : > { %s1309_s22 = smov (!%p862_p10, %s1307_s22), 63 }
  0x66   : > { %s397_s5 = scalar_lea.vmem %s1274_s1, %s1309_s22 }
  0x67   : > { %v414_v5 = vld [vmem:[%s397_s5] sm:$0x1] }
  0x68   : > { %415 = vst [vmem:[#allocation2 + $0x5] sm:$0x1] %v414_v5 }
  0x69   : > { %433 = vsyncadd [#allocation3 + $0x5], 16  ;;  %s441_s6 = sadd.s32 6, %s1172_s30 }
  0x6a   : > { %s442_s7 = sld [smem:[#allocation5 + %s441_s6]] }
  0x70   : > { %p443_p11 = scmp.gt.s32.totalorder %s442_s7, 0  ;;  %p868_p12 = scmp.lt.s32.totalorder %s442_s7, 63 }
  0x72   : > { %s1311_s7 = smov (!%p443_p11, %s442_s7), 0 }
  0x73   : > { %s1313_s7 = smov (!%p868_p12, %s1311_s7), 63 }
  0x74   : > { %s447_s11 = scalar_lea.vmem %s1274_s1, %s1313_s7 }
  0x75   : > { %v464_v6 = vld [vmem:[%s447_s11] sm:$0x1] }
  0x76   : > { %465 = vst [vmem:[#allocation2 + $0x6] sm:$0x1] %v464_v6 }
  0x77   : > { %483 = vsyncadd [#allocation3 + $0x6], 16  ;;  %s491_s12 = sadd.s32 7, %s1172_s30 }
  0x78   : > { %s492_s13 = sld [smem:[#allocation5 + %s491_s12]] }
  0x7e   : > { %p493_p13 = scmp.gt.s32.totalorder %s492_s13, 0  ;;  %p874_p0 = scmp.lt.s32.totalorder %s492_s13, 63 }
  0x80   : > { %s1315_s13 = smov (!%p493_p13, %s492_s13), 0 }
  0x81   : > { %s1317_s13 = smov (!%p874_p0, %s1315_s13), 63 }
  0x82   : > { %s497_s0 = scalar_lea.vmem %s1274_s1, %s1317_s13 }
  0x83   : > { %v514_v7 = vld [vmem:[%s497_s0] sm:$0x1] }
  0x84   : > { %515 = vst [vmem:[#allocation2 + $0x7] sm:$0x1] %v514_v7 }
  0x85   : > { %533 = vsyncadd [#allocation3 + $0x7], 16  ;;  %s1211_s22 = smov 0  }
  0x86 LB: >> { %p540_p1 = scmp.lt.s32.totalorder %s1089_s22, 0  ;;  %s541_s30 = ssub.s32 0, %s1089_s22  ;;  %s1089_s22 = sphi %s1211_s22, %s539_s22  }
  0x87   : >> { %s879_s24 = smin.u32 %s1089_s22, %s541_s30 }
  0x88   : >> { %s543_s26 = sand.u32 7, %s879_s24  }
  0x89   : >> { %s544_s5 = ssub.s32 0, %s543_s26 }
  0x8a   : >> { %s1319_s5 = smov (!%p540_p1, %s544_s5), %s543_s26 }
  0x8b   : >> { %p881_p2 = scmp.lt.s32.totalorder %s1319_s5, 0  ;;  %s550_s6 = sadd.s32 8, %s1319_s5 }
  0x8d   : >> { %s1321_s6 = smov (!%p881_p2, %s550_s6), %s1319_s5 }
  0x8e   : >> { %s552_s7 = scalar_lea.sflag [#allocation3], %s1321_s6 }
  0x8f   : >> { %1057 = dma.done.wait %s552_s7, 16 }
  0x90   : >> { %1058 = vsyncadd %s552_s7, 4294967280  ;;  %s556_s8 = sadd.s32 8, %s1089_s22 }
  0x91   : >> { %p882_p3 = scmp.ge.s32.totalorder %s556_s8, 8 }
  0x92   : >> { %s562_s10 = sshra.s32 (!%p882_p3), %s556_s8, 7  ;;  %s567_s11 = sand.u32 (!%p882_p3), 127, %s556_s8 }
  0x93   : >> { %560 = sbr.rel (%p882_p3) target bundleno = 164 (0xa4), region = 275  ;;  %s564_s12 = sadd.s32 (!%p882_p3), %s1077_s19, %s562_s10 }
  0x94   : >> { %p574_p5 = scmp.lt.s32.totalorder (!%p882_p3), %s556_s8, 0  ;;  %s883_s13 = sshll.u32 (!%p882_p3), %s564_s12, 7 }
  0x95   : >> { %s575_s14 = ssub.s32 (!%p882_p3), 0, %s556_s8  ;;  %s568_s15 = sadd.s32 (!%p882_p3), %s883_s13, %s567_s11 }
  0x96   : >> { %s889_s0 = smin.u32 (!%p882_p3), %s575_s14, %s556_s8  ;;  %s569_s30 = sld [smem:[#allocation5 + %s568_s15]] (!%p882_p3) }
  0x97   : >> { %s577_s24 = sand.u32 (!%p882_p3), 7, %s889_s0   ;;  %s740_s12 = scalar_lea.vmem (!%p882_p3), [#allocation2], %s1089_s22 }
  0x98   : >> { %s578_s26 = ssub.s32 0, %s577_s24 }
  0x99   : >> { %s1323_s26 = smov (!%p574_p5, %s578_s26), %s577_s24 }
  0x9a   : >> { %p891_p6 = scmp.lt.s32.totalorder %s1323_s26, 0  ;;  %s584_s5 = sadd.s32 8, %s1323_s26 }
  0x9c   : >> { %p570_p7 = scmp.gt.s32.totalorder %s569_s30, 0  ;;  %p884_p9 = scmp.lt.s32.totalorder %s569_s30, 63 }
  0x9d   : >> { %s1325_s5 = smov (!%p891_p6, %s584_s5), %s1323_s26 }
  0x9e   : >> { %s1327_s30 = smov (!%p570_p7, %s569_s30), 0  ;;  %s588_s11 = scalar_lea.sflag [#allocation3], %s1325_s5 }
  0x9f   : >> { %s1329_s30 = smov (!%p884_p9, %s1327_s30), 63 }
  0xa0   : >> { %s586_s10 = scalar_lea.vmem %s1274_s1, %s1329_s30 }
  0xa1   : >> { %v603_v8 = vld [vmem:[%s586_s10] sm:$0x1] }
  0xa2   : >> { %892 = vst [vmem:[%s740_s12 + $0x8] sm:$0x1] %v603_v8 }
  0xa3   : >> { %622 = vsyncadd %s588_s11, 16 }
  0xa4 PF: >> { %s539_s22 = sadd.s32 1, %s1089_s22  }
  0xa5   : >> { %p536_p10 = scmp.ge.s32.totalorder %s539_s22, 8  }
  0xa6   : > { %v624_v10 = vld [vmem:[%s1275_s2] sm:$0xff] (%p536_p10)  ;;  %vm626_vm0 = vcmask (%p536_p10), 261120   ;;  %s894_s14 = sshll.u32 (%p536_p10), %s1077_s19, 3  ;;  %s642_s22 = sshll.u32 (%p536_p10), %s131_s9, 4  ;;  %s643_s22 = int_to_ptr.vmem [resolvable:$true] %s642_s22 }
  0xa7   : > { %538 = sbr.rel (!%p536_p10) target bundleno = 134 (0x86), region = 409  ;;  %s640_s30 = scalar_lea.hbm (%p536_p10), %s1276_s3, %s894_s14 }
  0xa8   : > { %s644_s24 = sshll.u32 (%p536_p10), %s640_s30, 4  ;;  %s629_s26 = scalar_lea.sflag (%p536_p10), [#allocation7], %s129_s29  ;;  %s645_s24 = int_to_ptr.hbm [resolvable:$true] %s644_s24 }
  0xa9   : > { %v623_v9 = vld [vmem:[#allocation2] sm:$0xff] (%p536_p10)  ;;  %s1013_s5 = sshra.s32 (%p536_p10), %s645_s24, 4  ;;  %s1019_s10 = scalar_lea.hbm (%p536_p10), %s1276_s3, 16  ;;  %s1014_s5 = int_to_ptr.hbm [resolvable:$true] %s1013_s5 }
  0xaa   : > { %v625_v11 = vadd.f32 (%p536_p10), %v624_v10, %v623_v9  ;;  %s1015_s6 = scalar_lea.hbm (%p536_p10), %s1014_s5, 8  ;;  %p1020_p0 = scmp.lt.s32.totalorder (%p536_p10), %s1014_s5, %s1276_s3 }
  0xab   : > { %p1016_p11 = scmp.ne.s32.totalorder (%p536_p10), %s1014_s5, %s1015_s6  ;;  %p1021_p1 = scmp.lt.s32.totalorder (%p536_p10), %s1019_s10, %s1015_s6 }
  0xac   : > { %627 = vst.msk [vmem:[%s131_s9] sm:$0xff] %vm626_vm0, %v625_v11 }
  0xad   : > { %p1017_p12 = pnand %p1016_p11, %p1155_p4  ;;  %p1022_p2 = por %p1021_p1, %p1020_p0 }
  0xaf   : > { %p1018_p13 = pneg %p1017_p12 }
  0xb1   : > { %p1023_p3 = pnand %p1022_p2, %p1018_p13 }
  0xb3   : > { %1026 = shalt.err (!%p1023_p3)
}
  0xb4   : > { %923 = dma.vmem_to_hbm [thread:$0]  (%p1155_p4), %s643_s22, 128, %s645_s24, %s629_s26  }
  0xb5 PF: > { %p929_p5 = scmp.ge.s32.totalorder %s1085_s21, 2  ;;  %s656_s29 = sand.u32 1, %s1065_s16  }
  0xb6   : > { %s657_s4 = scalar_lea.sflag [#allocation7], %s656_s29 }
  0xb7   : > { %p926_p6 = pnand %p929_p5, %p1162_p8 }
  0xb9   : > { %p927_p7 = pneg %p926_p6 }
  0xbb   : > { %1060 = dma.done.wait (%p927_p7), %s657_s4, 128  }
  0xbc   : > { %1062 = vsyncadd (%p927_p7), %s657_s4, 4294967168  ;;  %s24_s21 = sadd.s32 1, %s1085_s21   ;;  %s1279_s16 = smov %s1069_s17 }
  0xbd   : > { %p21_p9 = scmp.ge.s32.totalorder %s24_s21, 4   ;;  %s1280_s17 = smov %s1073_s18 }
  0xbe   : > { %s1281_s18 = smov %s1168_s28  ;;  %s1282_s19 = smov %s1081_s20 }
  0xbf   : > { %s1283_s20 = smov %s1285_s23  ;;  %23 = sbr.rel (!%p21_p9) target bundleno = 10 (0xa), region = 420 }
  0xc4   :  { %663 = vsyncpa [#allocation7], 1 }
  0xc5   :  { %665 = vsyncpa [#allocation7 + $0x1], 1 }
  0xc6   :  { %666 = vsyncmov [#allocation3] }
  0xc9   :  { %s667_s25 = vpop.sfrf %666 }
  0xca   :  { %p897_p4 = scmp.ne.s32.totalorder %s667_s25, 0 }
  0xcc   :  { %671 = shalt.err (%p897_p4)  }
  0xcd   :  { %673 = vsyncmov [#allocation3 + $0x1] }
  0xd0   :  { %s674_s27 = vpop.sfrf %673 }
  0xd1   :  { %p898_p8 = scmp.ne.s32.totalorder %s674_s27, 0 }
  0xd3   :  { %678 = shalt.err (%p898_p8)  }
  0xd4   :  { %680 = vsyncmov [#allocation3 + $0x2] }
  0xd7   :  { %s681_s9 = vpop.sfrf %680 }
  0xd8   :  { %p899_p10 = scmp.ne.s32.totalorder %s681_s9, 0 }
  0xda   :  { %685 = shalt.err (%p899_p10)  }
  0xdb   :  { %687 = vsyncmov [#allocation3 + $0x3] }
  0xde   :  { %s688_s28 = vpop.sfrf %687 }
  0xdf   :  { %p900_p11 = scmp.ne.s32.totalorder %s688_s28, 0 }
  0xe1   :  { %692 = shalt.err (%p900_p11)  }
  0xe2   :  { %694 = vsyncmov [#allocation3 + $0x4] }
  0xe5   :  { %s695_s21 = vpop.sfrf %694 }
  0xe6   :  { %p901_p12 = scmp.ne.s32.totalorder %s695_s21, 0 }
  0xe8   :  { %699 = shalt.err (%p901_p12)  }
  0xe9   :  { %701 = vsyncmov [#allocation3 + $0x5] }
  0xec   :  { %s702_s1 = vpop.sfrf %701 }
  0xed   :  { %p902_p13 = scmp.ne.s32.totalorder %s702_s1, 0 }
  0xef   :  { %706 = shalt.err (%p902_p13)  }
  0xf0   :  { %708 = vsyncmov [#allocation3 + $0x6] }
  0xf3   :  { %s709_s2 = vpop.sfrf %708 }
  0xf4   :  { %p903_p0 = scmp.ne.s32.totalorder %s709_s2, 0 }
  0xf6   :  { %713 = shalt.err (%p903_p0)  }
  0xf7   :  { %715 = vsyncmov [#allocation3 + $0x7] }
  0xfa   :  { %s716_s3 = vpop.sfrf %715 }
  0xfb   :  { %p904_p1 = scmp.ne.s32.totalorder %s716_s3, 0 }
  0xfd   :  { %720 = shalt.err (%p904_p1)  }

</bundles_post_ra>
